<compile_context>
chip_gen: v6e
topology: v6e:2x2x1
jax: 0.10.0
libtpu: 0.0.40
codegen_flags: <defaults>
</compile_context>

<pallas_src>
import functools

import jax
import jax.numpy as jnp
from jax import lax
from jax.experimental import pallas as pl
from jax.experimental.pallas import tpu as pltpu

NEG_SLOPE = 0.01   # F.leaky_relu default
EPS = 1e-12        # F.normalize default eps


def _round_up(a, b):
    return (a + b - 1) // b * b


def _pad_nodes(n, row_tile=512):
    """Pad node count to >= n+1 (dummy row for padded edges), multiple of 8,
    and (for large graphs) a multiple of the linear-layer row tile."""
    n_pad = _round_up(n + 1, 8)
    if n_pad <= row_tile:
        return n_pad, n_pad
    return _round_up(n_pad, row_tile), row_tile


def _vmem_limit_bytes():
    """Generation-aware scoped-VMEM limit (v5e/v6e: ~108 MiB, v7x: ~54 MiB)."""
    try:
        cap = int(pltpu.get_tpu_info().vmem_capacity_bytes)
    except Exception:
        cap = 64 * 1024 * 1024
    return min(int(cap * 0.85), 110 * 1024 * 1024)


def _factor_mats(d, k, dd):
    """(d,k) / (k,d) 0-1 factor-block indicators built from iota compares."""
    ri = lax.broadcasted_iota(jnp.int32, (d, k), 0)
    ci = lax.broadcasted_iota(jnp.int32, (d, k), 1)
    fmat = jnp.logical_and(ri >= ci * dd, ri < (ci + 1) * dd).astype(jnp.float32)
    rj = lax.broadcasted_iota(jnp.int32, (k, d), 0)
    cj = lax.broadcasted_iota(jnp.int32, (k, d), 1)
    fmat_t = jnp.logical_and(cj >= rj * dd, cj < (rj + 1) * dd).astype(jnp.float32)
    return fmat, fmat_t


def _factor_normalize_val(v, fmat, fmat_t):
    """F.normalize(v.view(n,k,dd), dim=2).view(n,d) without the reshape:
    per-factor squared sums / broadcast via MXU indicator matmuls."""
    ss = jnp.dot(v * v, fmat, preferred_element_type=jnp.float32)     # (rows, k)
    inv = lax.rsqrt(jnp.maximum(ss, EPS * EPS))
    return v * jnp.dot(inv, fmat_t, preferred_element_type=jnp.float32)


# ---------------------------------------------------------------------------
# Linear (+ optional fused leaky_relu):  y = x @ W + b, row-tiled, 'parallel'.
# ---------------------------------------------------------------------------
def _linear_kernel(x_ref, w_ref, b_ref, o_ref, *, apply_act):
    y = jnp.dot(x_ref[...], w_ref[...], preferred_element_type=jnp.float32)
    y = y + b_ref[...]
    if apply_act:
        y = jnp.where(y >= 0, y, NEG_SLOPE * y)
    o_ref[...] = y


def linear(x, w, b, *, apply_act, tm):
    n, din = x.shape
    dout = w.shape[1]
    assert n % tm == 0
    kernel = functools.partial(_linear_kernel, apply_act=apply_act)
    return pl.pallas_call(
        kernel,
        out_shape=jax.ShapeDtypeStruct((n, dout), jnp.float32),
        grid=(n // tm,),
        in_specs=[
            pl.BlockSpec((tm, din), lambda i: (i, 0)),
            pl.BlockSpec((din, dout), lambda i: (0, 0)),
            pl.BlockSpec((1, dout), lambda i: (0, 0)),
        ],
        out_specs=pl.BlockSpec((tm, dout), lambda i: (i, 0)),
        compiler_params=pltpu.CompilerParams(
            dimension_semantics=("parallel",)),
    )(x, w, b.reshape(1, dout))


# ---------------------------------------------------------------------------
# Per-factor L2 normalization, row-tiled, 'parallel'.
# ---------------------------------------------------------------------------
def _normalize_kernel(x_ref, o_ref, *, k, dd):
    d = k * dd
    fmat, fmat_t = _factor_mats(d, k, dd)
    o_ref[...] = _factor_normalize_val(x_ref[...], fmat, fmat_t)


def factor_normalize(x, *, k, dd, tm):
    n, d = x.shape
    assert n % tm == 0 and d == k * dd
    kernel = functools.partial(_normalize_kernel, k=k, dd=dd)
    return pl.pallas_call(
        kernel,
        out_shape=jax.ShapeDtypeStruct((n, d), jnp.float32),
        grid=(n // tm,),
        in_specs=[pl.BlockSpec((tm, d), lambda i: (i, 0))],
        out_specs=pl.BlockSpec((tm, d), lambda i: (i, 0)),
        compiler_params=pltpu.CompilerParams(
            dimension_semantics=("parallel",)),
    )(x)


# ---------------------------------------------------------------------------
# DisenConv: `niter` routing iterations over a (niter, n_edge_blocks) grid.
# The output block (constant index map, VMEM-resident) doubles as u_cur;
# u_acc is a node-sized scratch zeroed at the start of every iteration.
# ---------------------------------------------------------------------------
def _disen_conv_kernel(src_sm, trg_sm,                      # scalar prefetch (SMEM)
                       xn_ref, src_ref, trg_ref,            # VMEM inputs
                       o_ref,                               # output / u_cur
                       uacc_ref, msg_ref, *gather_scratch,  # scratch
                       te, k, dd, inv_tau, apply_act, vector_gather):
    it = pl.program_id(0)
    e = pl.program_id(1)
    n_it = pl.num_programs(0)
    n_e = pl.num_programs(1)
    d = k * dd

    fmat, fmat_t = _factor_mats(d, k, dd)

    @pl.when(jnp.logical_and(it == 0, e == 0))
    def _init():
        # u_cur := x_norm (output has a constant index map => stays resident)
        o_ref[...] = xn_ref[...]

    @pl.when(e == 0)
    def _zero_acc():
        uacc_ref[...] = jnp.zeros_like(uacc_ref)

    base = e * te

    # ---- gather z = x_norm[src], u_trg = u_cur[trg] for this edge block ----
    if vector_gather:
        src_idx = src_ref[e]                 # (te,) int32
        trg_idx = trg_ref[e]                 # (te,) int32
        z = jnp.take(xn_ref[...], src_idx, axis=0)       # (te, d)
        u_trg = jnp.take(o_ref[...], trg_idx, axis=0)    # (te, d)
    else:
        # Fallback: unrolled per-edge row copies from SMEM scalar indices.
        zb_ref, ub_ref = gather_scratch

        def _gather(j, carry):
            si = src_sm[base + j]
            ti = trg_sm[base + j]
            zb_ref[pl.ds(j, 1), :] = xn_ref[pl.ds(si, 1), :]
            ub_ref[pl.ds(j, 1), :] = o_ref[pl.ds(ti, 1), :]
            return carry

        lax.fori_loop(0, te, _gather, 0, unroll=8)
        z = zb_ref[...]
        u_trg = ub_ref[...]

    # ---- routing softmax & messages (vectorized over the edge block) -------
    logits = jnp.dot(z * u_trg, fmat,
                     preferred_element_type=jnp.float32) * inv_tau    # (te, k)
    if inv_tau > 100.0:
        # per-factor normalization bounds |logit| <= 1/tau; stabilize only if
        # tau is configured very small.
        logits = logits - jnp.max(logits, axis=1, keepdims=True)
    pexp = jnp.exp(logits)
    p = pexp * pl.reciprocal(jnp.sum(pexp, axis=1, keepdims=True), approx=True)
    msg_ref[...] = z * jnp.dot(p, fmat_t, preferred_element_type=jnp.float32)

    # ---- scatter-add into the node accumulator (exact, unrolled RMW) -------
    def _scatter(j, carry):
        ti = trg_sm[base + j]
        uacc_ref[pl.ds(ti, 1), :] = (uacc_ref[pl.ds(ti, 1), :]
                                     + msg_ref[pl.ds(j, 1), :])
        return carry

    lax.fori_loop(0, te, _scatter, 0, unroll=8)

    @pl.when(e == n_e - 1)
    def _finalize_iter():
        o_ref[...] = _factor_normalize_val(uacc_ref[...] + xn_ref[...],
                                           fmat, fmat_t)

    if apply_act:
        @pl.when(jnp.logical_and(it == n_it - 1, e == n_e - 1))
        def _apply_act():
            u = o_ref[...]
            o_ref[...] = jnp.where(u >= 0, u, NEG_SLOPE * u)


def disen_conv(x_norm, src2d, trg2d, src_flat, trg_flat, *, k, dd, niter, tau,
               apply_act, vmem_limit, vector_gather=True):
    n_pad, d = x_norm.shape
    n_eblk, te = src2d.shape

    scratch = [pltpu.VMEM((n_pad, d), jnp.float32),   # u_acc
               pltpu.VMEM((te, d), jnp.float32)]      # per-block messages
    if not vector_gather:
        scratch += [pltpu.VMEM((te, d), jnp.float32),  # gathered z block
                    pltpu.VMEM((te, d), jnp.float32)]  # gathered u[trg] block

    kernel = functools.partial(_disen_conv_kernel, te=te, k=k, dd=dd,
                               inv_tau=1.0 / float(tau), apply_act=apply_act,
                               vector_gather=vector_gather)
    grid_spec = pltpu.PrefetchScalarGridSpec(
        num_scalar_prefetch=2,
        grid=(niter, n_eblk),
        in_specs=[
            pl.BlockSpec((n_pad, d), lambda it, e, s, t: (0, 0)),
            pl.BlockSpec((n_eblk, te), lambda it, e, s, t: (0, 0)),
            pl.BlockSpec((n_eblk, te), lambda it, e, s, t: (0, 0)),
        ],
        out_specs=pl.BlockSpec((n_pad, d), lambda it, e, s, t: (0, 0)),
        scratch_shapes=scratch,
    )
    return pl.pallas_call(
        kernel,
        out_shape=jax.ShapeDtypeStruct((n_pad, d), jnp.float32),
        grid_spec=grid_spec,
        compiler_params=pltpu.CompilerParams(
            dimension_semantics=("arbitrary", "arbitrary"),
            vmem_limit_bytes=vmem_limit),
    )(src_flat, trg_flat, x_norm, src2d, trg2d)


# ---------------------------------------------------------------------------
# Model wrapper (parameter setup / padding is plain-JAX glue)
# ---------------------------------------------------------------------------
class DisentangledGNNPallas:
    def __init__(self, key, nfeat, nclass, *, n_latentdims=32, n_routit=3,
                 n_layers=2, tau=1.0):
        self.k = 4                                   # latent_factor_nums
        self.dd = n_latentdims                       # latent_factor_dims
        self.d = self.k * self.dd
        self.routit = n_routit
        self.tau = tau
        self.nlayer = 1 if n_layers <= 2 else n_layers - 2
        self.nclass = nclass
        d = self.d

        k1, k2, k3, k4 = jax.random.split(key, 4)
        # SparseInputLinear: uniform(-1/sqrt(out_dim), 1/sqrt(out_dim))
        stdv = 1.0 / float(d) ** 0.5
        self.w_pca = jax.random.uniform(k1, (nfeat, d), jnp.float32, -stdv, stdv)
        self.b_pca = jax.random.uniform(k2, (d,), jnp.float32, -stdv, stdv)
        # nn.Linear(d, nclass): uniform(-1/sqrt(in_features), ...)
        bound = 1.0 / float(d) ** 0.5
        self.w_clf = jax.random.uniform(k3, (d, nclass), jnp.float32, -bound, bound)
        self.b_clf = jax.random.uniform(k4, (nclass,), jnp.float32, -bound, bound)

        # Classifier output padded to lane-dense 128 columns; sliced afterwards.
        self.nclass_pad = _round_up(max(nclass, 1), 128)
        self.w_clf_pad = jnp.zeros((d, self.nclass_pad), jnp.float32)\
            .at[:, :nclass].set(self.w_clf)
        self.b_clf_pad = jnp.zeros((self.nclass_pad,), jnp.float32)\
            .at[:nclass].set(self.b_clf)

        self.vmem_limit = _vmem_limit_bytes()
        self._vector_gather = None   # decided (and cached) on first conv call

    def _conv(self, hn, src2d, trg2d, src, trg):
        kwargs = dict(k=self.k, dd=self.dd, niter=self.routit, tau=self.tau,
                      apply_act=True, vmem_limit=self.vmem_limit)
        if self._vector_gather is None:
            try:
                h = disen_conv(hn, src2d, trg2d, src, trg,
                               vector_gather=True, **kwargs)
                jax.block_until_ready(h)
                self._vector_gather = True
                return h
            except Exception:
                # Mosaic build without gather lowering: fall back to the
                # unrolled row-copy gather (still exact, slower).
                self._vector_gather = False
        return disen_conv(hn, src2d, trg2d, src, trg,
                          vector_gather=self._vector_gather, **kwargs)

    def __call__(self, x, edge_index):
        n = x.shape[0]
        m = edge_index.shape[1]

        n_pad, tm = _pad_nodes(n)
        x_p = jnp.zeros((n_pad, x.shape[1]), jnp.float32).at[:n].set(
            x.astype(jnp.float32))

        # Edge tiling: te up to 512; padded edges reference a dummy node row.
        te = min(512, _round_up(max(m, 1), 128))
        m_pad = _round_up(max(m, 1), te)
        dummy = n
        src = jnp.full((m_pad,), dummy, jnp.int32).at[:m].set(
            edge_index[0].astype(jnp.int32))
        trg = jnp.full((m_pad,), dummy, jnp.int32).at[:m].set(
            edge_index[1].astype(jnp.int32))
        src2d = src.reshape(m_pad // te, te)
        trg2d = trg.reshape(m_pad // te, te)

        # x = dropout(leaky_relu(pca(x)))   (dropout == identity in eval mode)
        h = linear(x_p, self.w_pca, self.b_pca, apply_act=True, tm=tm)
        # base GNN layers: x = dropout(leaky_relu(conv(x, edge_index)))
        for _ in range(self.nlayer):
            hn = factor_normalize(h, k=self.k, dd=self.dd, tm=tm)
            h = self._conv(hn, src2d, trg2d, src, trg)
        # classifier head (lane-dense padded output, sliced back)
        logits = linear(h, self.w_clf_pad, self.b_clf_pad, apply_act=False, tm=tm)
        return logits[:n, :self.nclass]


# ---------------------------------------------------------------------------
# Pure-JAX reference of the PyTorch forward (eval mode), for a sanity check.
# ---------------------------------------------------------------------------
def _reference_forward(model, x, edge_index):
    src, trg = edge_index[0], edge_index[1]
    k, dd = model.k, model.dd

    def norm(v):
        vv = v.reshape(v.shape[0], k, dd)
        nrm = jnp.maximum(jnp.sqrt(jnp.sum(vv * vv, axis=2, keepdims=True)), EPS)
        return (vv / nrm).reshape(v.shape[0], -1)

    h = x.astype(jnp.float32) @ model.w_pca + model.b_pca
    h = jnp.where(h >= 0, h, NEG_SLOPE * h)
    for _ in range(model.nlayer):
        xn = norm(h)
        z = xn[src].reshape(-1, k, dd)
        u = xn
        for _ in range(model.routit):
            p = jax.nn.softmax(
                (z * u[trg].reshape(-1, k, dd)).sum(-1) / model.tau, axis=1)
            msg = (z * p[:, :, None]).reshape(-1, k * dd)
            u = jnp.zeros_like(xn).at[trg].add(msg)
            u = norm(u + xn)
        h = jnp.where(u >= 0, u, NEG_SLOPE * u)
    return h @ model.w_clf + model.b_clf


if __name__ == "__main__":
    key = jax.random.PRNGKey(0)
    kx, ks, kt, kp = jax.random.split(key, 4)

    n_nodes, nfeat, nclass, m_edges = 16, 32, 8, 48
    x = jax.random.normal(kx, (n_nodes, nfeat), jnp.float32)
    e_src = jax.random.randint(ks, (m_edges,), 0, n_nodes)
    e_trg = jax.random.randint(kt, (m_edges,), 0, n_nodes)
    edge_index = jnp.stack([e_src, e_trg], axis=0)           # (2, m)

    model = DisentangledGNNPallas(kp, nfeat, nclass,
                                  n_latentdims=32, n_routit=3, n_layers=2)
    out = model(x, edge_index)
    out = jax.block_until_ready(out)
    assert out.shape == (n_nodes, nclass)
    assert bool(jnp.all(jnp.isfinite(out)))

    ref = _reference_forward(model, x, edge_index)
    err = float(jnp.max(jnp.abs(out - ref)))
    assert err < 1e-2, f"kernel/reference mismatch: max|diff|={err}"

    print("KERNEL_OK")
</pallas_src>

<mosaic_0001>
module attributes {stable_mosaic.version = 11 : i64} {
  func.func @_linear_kernel(%arg0: i32, %arg1: memref<24x32xf32, #tpu.memory_space<vmem>>, %arg2: memref<32x128xf32, #tpu.memory_space<vmem>>, %arg3: memref<1x128xf32, #tpu.memory_space<vmem>>, %arg4: memref<24x128xf32, #tpu.memory_space<vmem>>) attributes {dimension_semantics = [#tpu.dimension_semantics<parallel>], iteration_bounds = array<i64: 1>, scalar_prefetch = 0 : i64, scratch_operands = 0 : i64, tpu.core_type = #tpu.core_type<tc>, window_params = [{transform_indices = @transform_0, window_bounds = array<i64: 24, 32>}, {pipeline_mode = #tpu.pipeline_mode<synchronous>, transform_indices = @transform_1, window_bounds = array<i64: 32, 128>}, {pipeline_mode = #tpu.pipeline_mode<synchronous>, transform_indices = @transform_2, window_bounds = array<i64: 1, 128>}, {transform_indices = @transform_3, window_bounds = array<i64: 24, 128>}]} {
    %c0 = arith.constant 0 : index
    %c0_0 = arith.constant 0 : index
    %0 = vector.load %arg1[%c0, %c0_0] : memref<24x32xf32, #tpu.memory_space<vmem>>, vector<24x32xf32>
    %c0_1 = arith.constant 0 : index
    %c0_2 = arith.constant 0 : index
    %1 = vector.load %arg2[%c0_1, %c0_2] : memref<32x128xf32, #tpu.memory_space<vmem>>, vector<32x128xf32>
    %cst = arith.constant dense<0.000000e+00> : vector<24x128xf32>
    %2 = tpu.matmul %0, %1, %cst {dimension_numbers = #tpu.dot_dimension_numbers<[1], [0], [0], [1], [0, 0, 1, 1], [], []>} : vector<24x32xf32>, vector<32x128xf32>, vector<24x128xf32> -> vector<24x128xf32>
    %c0_3 = arith.constant 0 : index
    %c0_4 = arith.constant 0 : index
    %3 = vector.load %arg3[%c0_3, %c0_4] : memref<1x128xf32, #tpu.memory_space<vmem>>, vector<1x128xf32>
    %4 = vector.broadcast %3 : vector<1x128xf32> to vector<24x128xf32>
    %5 = arith.addf %2, %4 : vector<24x128xf32>
    %cst_5 = arith.constant 0.000000e+00 : f32
    %6 = vector.broadcast %cst_5 : f32 to vector<24x128xf32>
    %7 = arith.cmpf oge, %5, %6 : vector<24x128xf32>
    %cst_6 = arith.constant 0.00999999977 : f32
    %8 = vector.broadcast %cst_6 : f32 to vector<24x128xf32>
    %9 = arith.mulf %8, %5 : vector<24x128xf32>
    %10 = arith.select %7, %5, %9 : vector<24x128xi1>, vector<24x128xf32>
    %c0_7 = arith.constant 0 : index
    %c0_8 = arith.constant 0 : index
    %11 = vector.load %arg4[%c0_7, %c0_8] : memref<24x128xf32, #tpu.memory_space<vmem>>, vector<24x128xf32>
    tpu.vector_store %arg4[%c0_7, %c0_8], %10 {strides = array<i32>} : memref<24x128xf32, #tpu.memory_space<vmem>>, vector<24x128xf32>,
    return
  }
  func.func @transform_0(%arg0: i32) -> (i32, i32) {
    %c0_i32 = arith.constant 0 : i32
    %c0_i32_0 = arith.constant 0 : i32
    return %arg0, %c0_i32 : i32, i32
  }
  func.func @transform_1(%arg0: i32) -> (i32, i32) {
    %c0_i32 = arith.constant 0 : i32
    %c0_i32_0 = arith.constant 0 : i32
    %c0_i32_1 = arith.constant 0 : i32
    return %c0_i32, %c0_i32_0 : i32, i32
  }
  func.func @transform_2(%arg0: i32) -> (i32, i32) {
    %c0_i32 = arith.constant 0 : i32
    %c0_i32_0 = arith.constant 0 : i32
    %c0_i32_1 = arith.constant 0 : i32
    return %c0_i32, %c0_i32_0 : i32, i32
  }
  func.func @transform_3(%arg0: i32) -> (i32, i32) {
    %c0_i32 = arith.constant 0 : i32
    %c0_i32_0 = arith.constant 0 : i32
    return %arg0, %c0_i32 : i32, i32
  }
}

</mosaic_0001>

<bundles_post_ra>
// kernel: tpu_custom_call.1
= control target key start
LH: loop header
LB: loop body
LE: loop exit
PB: predicated region body
PF: predicated region fallthrough
CT: control target
= control target key end

     0   :  { %8 = vsyncpa [#allocation3], 0  ;;  %s337_s0 = inlined_call_operand.hbm [shape: f32[24,32], index: 0, kind: input, shape index: {}]   ;;  %s338_s1 = inlined_call_operand.hbm [shape: f32[32,128], index: 1, kind: input, shape index: {}]   ;;  %s339_s2 = inlined_call_operand.vmem [shape: f32[1,128], index: 2, kind: input, shape index: {}]   ;;  %s340_s3 = inlined_call_operand.hbm [shape: f32[24,128], index: 3, kind: output, shape index: {}]  }
   0x1   :  { %9 = vsyncpa [#allocation6], 0 }
   0x2   :  { %10 = vsyncpa [#allocation4], 0  ;;  %s286_s12 = smov [#allocation2]  }
   0x3   :  { %s16_s13 = sshll.u32 %s286_s12, 4  ;;  %s17_s13 = int_to_ptr.vmem [resolvable:$true] %s16_s13 }
   0x4   :  { %s228_s14 = scalar_lea.vmem %s17_s13, 384  ;;  %p233_p1 = scmp.lt.s32.totalorder %s17_s13, %s17_s13 }
   0x5   :  { %p229_p0 = scmp.ne.s32.totalorder %s17_s13, %s228_s14  ;;  %p234_p2 = scmp.lt.s32.totalorder %s228_s14, %s228_s14 }
   0x7   :  { %p235_p3 = por %p234_p2, %p233_p1 }
   0x9   :  { %p236_p4 = pnand %p235_p3, %p229_p0 }
   0xb   :  { %239 = shalt.err (!%p236_p4)
}
   0xc   :  { %s287_s15 = smov 128   ;;  %s288_s16 = smov 8  }
   0xd   :  { %22 = dma.hbm_to_vmem [thread:$0]  %s337_s0, 384, %s17_s13, [#allocation3], %s287_s15, %s287_s15, %s288_s16  }
   0xe   :  { %s289_s19 = smov [#allocation5]  }
   0xf   :  { %s28_s20 = sshll.u32 %s289_s19, 4  ;;  %s29_s20 = int_to_ptr.vmem [resolvable:$true] %s28_s20 }
  0x10   :  { %s248_s21 = scalar_lea.vmem %s29_s20, 512  ;;  %p253_p6 = scmp.lt.s32.totalorder %s29_s20, %s29_s20 }
  0x11   :  { %p249_p5 = scmp.ne.s32.totalorder %s29_s20, %s248_s21  ;;  %p254_p7 = scmp.lt.s32.totalorder %s248_s21, %s248_s21 }
  0x13   :  { %p255_p8 = por %p254_p7, %p253_p6 }
  0x15   :  { %p256_p9 = pnand %p255_p8, %p249_p5 }
  0x17   :  { %259 = shalt.err (!%p256_p9)
}
  0x18   :  { %34 = dma.hbm_to_vmem [thread:$0]  %s338_s1, 512, %s29_s20, [#allocation6], %s287_s15, %s287_s15, %s288_s16  }
  0x19   :  { %280 = dma.done.wait [#allocation3], 384  }
  0x1a   :  { %281 = vsyncadd [#allocation3], 4294966912 }
  0x1b   :  { %282 = dma.done.wait [#allocation6], 512  }
  0x1c   :  { %283 = vsyncadd [#allocation6], 4294966784  ;;  %v290_v0 = vmov 0.0   ;;  %vm291_vm0 = vmmov 0   ;;  %v49_v1 = vld [vmem:[#allocation5 + $0x18] sm:$0xff]  ;;  %v48_v2 = vld [vmem:[#allocation5 + $0x10] sm:$0xff] }
  0x1d   :  { %205 = vmatprep.subr.mxu1 %v290_v0  ;;  %188 = vmatprep.subr.mxu0 %v290_v0  ;;  %v47_v3 = vld [vmem:[#allocation5 + $0x8] sm:$0xff]  ;;  %v46_v4 = vld [vmem:[#allocation5] sm:$0xff]  ;;  %v44_v5 = vld [vmem:[#allocation2 + $0x8] sm:$0xff]  ;;  %vm57_vm1 = vcmask 261120   ;;  %s292_s24 = smov [#allocation7]  }
  0x1e   :  { %199 = vmatprep.mubr.msk.f32.mxu1 %vm291_vm0, %v290_v0  ;;  %196 = vmatprep.mubr.msk.f32.mxu0 %vm291_vm0, %v290_v0  ;;  %v43_v6 = vld [vmem:[#allocation2] sm:$0xff]  ;;  %v45_v7 = vld [vmem:[#allocation2 + $0x10] sm:$0xff]  ;;  %s164_s25 = sshll.u32 %s292_s24, 4  ;;  %s165_s25 = int_to_ptr.vmem [resolvable:$true] %s164_s25 }
  0x1f   :  { %209 = vmatpush3.msra.mxu1 %v49_v1  ;;  %189 = vmatpush3.msra.mxu0 %v49_v1  ;;  %v177_v8 = vld [vmem:[%s339_s2] ss:$0 sm:$0xff]  ;;  %s260_s2 = scalar_lea.vmem %s165_s25, 384  ;;  %p265_p11 = scmp.lt.s32.totalorder %s165_s25, %s165_s25 }
  0x20   :  { %206 = vmatprep.subr.mxu1 %v290_v0  ;;  %190 = vmatprep.subr.mxu0 %v290_v0  ;;  %p261_p10 = scmp.ne.s32.totalorder %s165_s25, %s260_s2  ;;  %p266_p12 = scmp.lt.s32.totalorder %s260_s2, %s260_s2 }
  0x21   :  { %210 = vmatpush3.msra.mxu1 %v48_v2  ;;  %191 = vmatpush3.msra.mxu0 %v48_v2 }
  0x22   :  { %207 = vmatprep.subr.mxu1 %v290_v0  ;;  %192 = vmatprep.subr.mxu0 %v290_v0  ;;  %p267_p13 = por %p266_p12, %p265_p11 }
  0x23   :  { %211 = vmatpush3.msra.mxu1 %v47_v3  ;;  %193 = vmatpush3.msra.mxu0 %v47_v3 }
  0x24   :  { %208 = vmatprep.subr.mxu1 %v290_v0  ;;  %194 = vmatprep.subr.mxu0 %v290_v0  ;;  %p268_p0 = pnand %p267_p13, %p261_p10 }
  0x25   :  { %212 = vmatpush3.msra.mxu1 %v46_v4  ;;  %195 = vmatpush3.msra.mxu0 %v46_v4 }
  0x26   :  { %200 = vmatmul.mubr.msk.f32.vlgmr.msra.gmra.mxu1 %vm57_vm1, %v44_v5  ;;  %197 = vmatmul.mubr.msk.f32.vlgmr.msra.gmra.mxu0 %vm57_vm1, %v43_v6 }
  0x27   :  { %202 = vmatprep.mubr.msk.f32.mxu1 %vm291_vm0, %v290_v0 }
  0x2a   :  { %203 = vmatmul.mubr.msk.f32.gmra.mxu1 %vm57_vm1, %v45_v7 }
  0xe6   :  { %v138_v9 = vpop.f32.mrf.mxu1  ;;  %v133_v10 = vpop.f32.mrf.mxu0 }
  0xe7   :  { %v139_v11 = vadd.f32 %v177_v8, %v138_v9  ;;  %v134_v12 = vadd.f32 %v177_v8, %v133_v10 }
  0xe8   :  { %v201_v13 = vpop.f32.mrf.mxu1  ;;  %v198_v14 = vpop.f32.mrf.mxu0 }
  0xe9   :  { %vm148_vm2 = vcmp.ge.f32.partialorder %v139_v11, 0.0  ;;  %v151_v15 = vmul.f32 0.01, %v139_v11  ;;  %vm147_vm3 = vcmp.ge.f32.partialorder %v134_v12, 0.0  ;;  %v150_v16 = vmul.f32 0.01, %v134_v12 }
  0xea   :  { %v143_v17 = vpop.f32.mrf.mxu1 }
  0xeb   :  { %v154_v18 = vsel %vm148_vm2, %v139_v11, %v151_v15  ;;  %v153_v19 = vsel %vm147_vm3, %v134_v12, %v150_v16  ;;  %v144_v20 = vadd.f32 %v177_v8, %v143_v17 }
  0xec   :  { %157 = vst [vmem:[#allocation7 + $0x8] sm:$0xff] %v154_v18  ;;  %156 = vst [vmem:[#allocation7] sm:$0xff] %v153_v19  ;;  %v204_v21 = vpop.f32.mrf.mxu1 }
  0xed   :  { %vm149_vm4 = vcmp.ge.f32.partialorder %v144_v20, 0.0  ;;  %v152_v22 = vmul.f32 0.01, %v144_v20 }
  0xef   :  { %v155_v23 = vsel %vm149_vm4, %v144_v20, %v152_v22 }
  0xf0   :  { %158 = vst [vmem:[#allocation7 + $0x10] sm:$0xff] %v155_v23 }
  0xf1   :  { %271 = shalt.err (!%p268_p0)
}
  0xf2   :  { %170 = dma.vmem_to_hbm [thread:$0]  %s165_s25, 384, %s340_s3, [#allocation4], %s287_s15, %s287_s15, %s288_s16  }
  0xf3   :  { %284 = dma.done.wait [#allocation4], 384  }
  0xf4   :  { %285 = vsyncadd [#allocation4], 4294966912 }
  0xf5   :  { %174 = vsyncpa [#allocation3], 1 }
  0xf6   :  { %175 = vsyncpa [#allocation6], 1 }
  0xf7   :  { %176 = vsyncpa [#allocation4], 1 }

</bundles_post_ra>
